<compile_context>
chip_gen: v7x
topology: tpu7x:2x2x1
jax: 0.10.0
libtpu: 0.0.40
codegen_flags: <defaults>
</compile_context>

<pallas_src>
import functools

import jax
import jax.numpy as jnp
from jax.experimental import pallas as pl
from jax.experimental.pallas import tpu as pltpu


def _round_up(x, m):
    return ((x + m - 1) // m) * m


def _harmonic_vae_loss_kernel(
    x_orig_ref, x_recon_ref, z_ref, mu_ref, log_var_ref,   # inputs
    out_ref,                                               # output (8,) SMEM
    acc_ref,                                               # SMEM scratch (2,)
    *, total_elems, batch,
    sparsity_target, sparsity_weight, kl_weight, spectral_weight,
):
    i = pl.program_id(0)

    # ---- init accumulators (scratch is NOT zero-initialized) ----------------
    @pl.when(i == 0)
    def _():
        acc_ref[0] = jnp.float32(0.0)
        acc_ref[1] = jnp.float32(0.0)

    # ---- per-tile partial sums (promote per tile, accumulate in f32) --------
    xo = x_orig_ref[...].astype(jnp.float32)    # (B, td)
    xr = x_recon_ref[...].astype(jnp.float32)   # (B, td)

    diff = xo - xr
    diff2 = diff * diff
    emph = jnp.sqrt(jnp.abs(xo) + 1e-8)

    # lane-axis reduce first, then the small cross-sublane reduce.
    recon_part = jnp.sum(jnp.sum(diff2, axis=-1, keepdims=True))
    spec_part = jnp.sum(jnp.sum(emph * diff2, axis=-1, keepdims=True))

    acc_ref[0] = acc_ref[0] + recon_part
    acc_ref[1] = acc_ref[1] + spec_part

    # ---- finalize: latent terms computed exactly once, scalars written once -
    @pl.when(i == pl.num_programs(0) - 1)
    def _():
        inv_n = jnp.float32(1.0 / total_elems)
        recon_loss = acc_ref[0] * inv_n
        spec_loss = acc_ref[1] * inv_n

        mu = mu_ref[...].astype(jnp.float32)       # (B, L)
        lv = log_var_ref[...].astype(jnp.float32)  # (B, L)
        z = z_ref[...].astype(jnp.float32)         # (B, L)

        kl_sum = -0.5 * jnp.sum(1.0 + lv - mu * mu - jnp.exp(lv))
        kl_loss = kl_sum / jnp.float32(batch)

        avg_activation = jnp.mean(jnp.abs(z), axis=0)   # (L,)
        t = jnp.float32(sparsity_target)
        sparsity_loss = jnp.sum(
            t * jnp.log((t + 1e-8) / (avg_activation + 1e-8))
            + (1.0 - t) * jnp.log((1.0 - t + 1e-8) / (1.0 - avg_activation + 1e-8))
        )

        total_loss = (
            recon_loss
            + jnp.float32(spectral_weight) * spec_loss
            + jnp.float32(kl_weight) * kl_loss
            + jnp.float32(sparsity_weight) * sparsity_loss
        )

        out_ref[0] = total_loss
        out_ref[1] = recon_loss
        out_ref[2] = spec_loss
        out_ref[3] = kl_loss
        out_ref[4] = sparsity_loss
        out_ref[5] = jnp.float32(0.0)
        out_ref[6] = jnp.float32(0.0)
        out_ref[7] = jnp.float32(0.0)


def harmonic_vae_loss(
    x_orig, x_recon, z, mu, log_var,
    sparsity_target=0.05, sparsity_weight=0.1, kl_weight=0.01, spectral_weight=0.5,
    *, feature_tile=None, max_tile_bytes=2 * 1024 * 1024,
):
    """Returns (total_loss, loss_components) mirroring HarmonicVAELoss.forward."""
    batch = x_orig.shape[0]

    # Layout glue: flatten to [batch, features]; feature axis is the lane axis.
    xo2 = x_orig.reshape(batch, -1)
    xr2 = x_recon.reshape(batch, -1)
    z2 = z.reshape(batch, -1)
    mu2 = mu.reshape(batch, -1)
    lv2 = log_var.reshape(batch, -1)

    d = xo2.shape[1]
    latent = z2.shape[1]
    total_elems = batch * d          # true (unpadded) element count for the means

    # Feature-axis tile: multiple of 128 lanes, capped so one tile per heavy
    # input stays ~<= max_tile_bytes (2 inputs x 2 pipeline buffers fits the
    # v5e 16 MiB / v7x 32 MiB scoped-VMEM budgets with headroom).
    itemsize = jnp.dtype(xo2.dtype).itemsize
    if feature_tile is None:
        td = max(128, (max_tile_bytes // (batch * itemsize)) // 128 * 128)
        td = min(td, _round_up(d, 128))
    else:
        td = max(128, _round_up(feature_tile, 128))
        td = min(td, _round_up(d, 128))

    # Zero-pad the feature axis to a multiple of the tile (zeros contribute
    # nothing: diff == 0 on the padded region).
    d_pad = _round_up(d, td)
    if d_pad != d:
        pad = ((0, 0), (0, d_pad - d))
        xo2 = jnp.pad(xo2, pad)
        xr2 = jnp.pad(xr2, pad)
    num_tiles = d_pad // td

    kernel = functools.partial(
        _harmonic_vae_loss_kernel,
        total_elems=total_elems,
        batch=batch,
        sparsity_target=float(sparsity_target),
        sparsity_weight=float(sparsity_weight),
        kl_weight=float(kl_weight),
        spectral_weight=float(spectral_weight),
    )

    comps = pl.pallas_call(
        kernel,
        out_shape=jax.ShapeDtypeStruct((8,), jnp.float32),
        grid_spec=pltpu.PrefetchScalarGridSpec(
            num_scalar_prefetch=0,
            grid=(num_tiles,),
            in_specs=[
                # Heavy inputs: tiled along features, auto double-buffered.
                pl.BlockSpec((batch, td), lambda i: (0, i)),      # x_orig
                pl.BlockSpec((batch, td), lambda i: (0, i)),      # x_recon
                # Latents: tiny, constant block index -> resident, no re-DMA.
                pl.BlockSpec((batch, latent), lambda i: (0, 0)),  # z
                pl.BlockSpec((batch, latent), lambda i: (0, 0)),  # mu
                pl.BlockSpec((batch, latent), lambda i: (0, 0)),  # log_var
            ],
            out_specs=pl.BlockSpec(memory_space=pltpu.SMEM),
            scratch_shapes=[pltpu.SMEM((2,), jnp.float32)],
        ),
        compiler_params=pltpu.CompilerParams(
            dimension_semantics=("arbitrary",),       # reduction axis
            vmem_limit_bytes=32 * 1024 * 1024,
        ),
    )(xo2, xr2, z2, mu2, lv2)

    total_loss = comps[0]
    loss_components = {
        "total": comps[0],
        "recon": comps[1],
        "spectral": comps[2],
        "kl": comps[3],
        "sparsity": comps[4],
    }
    return total_loss, loss_components


def _reference_components(x_orig, x_recon, z, mu, log_var,
                          sparsity_target=0.05, sparsity_weight=0.1,
                          kl_weight=0.01, spectral_weight=0.5):
    """Pure-JAX reference matching the PyTorch module exactly."""
    batch = x_orig.shape[0]
    diff2 = (x_orig - x_recon) ** 2
    recon = jnp.mean(diff2)
    spec = jnp.mean(jnp.sqrt(jnp.abs(x_orig) + 1e-8) * diff2)
    kl = -0.5 * jnp.sum(1 + log_var - mu ** 2 - jnp.exp(log_var)) / batch
    avg = jnp.mean(jnp.abs(z.reshape(batch, -1)), axis=0)
    t = sparsity_target
    sp = jnp.sum(t * jnp.log((t + 1e-8) / (avg + 1e-8))
                 + (1 - t) * jnp.log((1 - t + 1e-8) / (1 - avg + 1e-8)))
    total = recon + spectral_weight * spec + kl_weight * kl + sparsity_weight * sp
    return {"total": total, "recon": recon, "spectral": spec, "kl": kl, "sparsity": sp}


if __name__ == "__main__":
    key = jax.random.PRNGKey(0)
    k1, k2, k3, k4, k5 = jax.random.split(key, 5)

    B, C, H, W = 2, 4, 16, 16   # x inputs, NCHW-like (flattened inside wrapper)
    L = 32                      # latent dim

    x_orig = jax.random.normal(k1, (B, C, H, W), dtype=jnp.float32)
    x_recon = x_orig + 0.1 * jax.random.normal(k2, (B, C, H, W), dtype=jnp.float32)
    # Keep |z| < 1 so the sparsity log terms stay in-domain (the PyTorch
    # reference also NaNs when mean(|z|) >= 1 — inherited precondition).
    z = 0.8 * jax.random.uniform(k3, (B, L), dtype=jnp.float32)
    mu = 0.5 * jax.random.normal(k4, (B, L), dtype=jnp.float32)
    log_var = 0.1 * jax.random.normal(k5, (B, L), dtype=jnp.float32)

    # feature_tile=256 -> 4 grid steps, exercising the tiled accumulation path.
    total, comps = harmonic_vae_loss(x_orig, x_recon, z, mu, log_var,
                                     feature_tile=256)
    total = jax.block_until_ready(total)

    ref = _reference_components(x_orig, x_recon, z, mu, log_var)
    for name in ("total", "recon", "spectral", "kl", "sparsity"):
        got, want = comps[name], ref[name]
        assert jnp.isfinite(got), (name, got)
        assert jnp.allclose(got, want, rtol=1e-4, atol=1e-5), (name, got, want)

    print("KERNEL_OK")
</pallas_src>

<mosaic_0001>
module attributes {stable_mosaic.version = 11 : i64} {
  func.func @_harmonic_vae_loss_kernel(%arg0: i32, %arg1: memref<2x256xf32, #tpu.memory_space<vmem>>, %arg2: memref<2x256xf32, #tpu.memory_space<vmem>>, %arg3: memref<2x32xf32, #tpu.memory_space<vmem>>, %arg4: memref<2x32xf32, #tpu.memory_space<vmem>>, %arg5: memref<2x32xf32, #tpu.memory_space<vmem>>, %arg6: memref<8xf32, #tpu.memory_space<smem>>, %arg7: memref<2xf32, #tpu.memory_space<smem>>) attributes {dimension_semantics = [#tpu.dimension_semantics<arbitrary>], iteration_bounds = array<i64: 4>, scalar_prefetch = 0 : i64, scratch_operands = 1 : i64, tpu.core_type = #tpu.core_type<tc>, window_params = [{transform_indices = @transform_0, window_bounds = array<i64: 2, 256>}, {transform_indices = @transform_1, window_bounds = array<i64: 2, 256>}, {pipeline_mode = #tpu.pipeline_mode<synchronous>, transform_indices = @transform_2, window_bounds = array<i64: 2, 32>}, {pipeline_mode = #tpu.pipeline_mode<synchronous>, transform_indices = @transform_3, window_bounds = array<i64: 2, 32>}, {pipeline_mode = #tpu.pipeline_mode<synchronous>, transform_indices = @transform_4, window_bounds = array<i64: 2, 32>}, {transform_indices = @transform_5, window_bounds = array<i64: 8>}]} {
    %c0_i32 = arith.constant 0 : i32
    %0 = arith.cmpi eq, %arg0, %c0_i32 : i32
    %1 = arith.extui %0 : i1 to i32
    %c0_i32_0 = arith.constant 0 : i32
    %2 = arith.cmpi ne, %1, %c0_i32_0 : i32
    scf.if %2 {
      %cst_12 = arith.constant 0.000000e+00 : f32
      %c0_13 = arith.constant 0 : index
      %33 = memref.load %arg7[%c0_13] : memref<2xf32, #tpu.memory_space<smem>>
      memref.store %cst_12, %arg7[%c0_13] : memref<2xf32, #tpu.memory_space<smem>>
      %cst_14 = arith.constant 0.000000e+00 : f32
      %c1_15 = arith.constant 1 : index
      %34 = memref.load %arg7[%c1_15] : memref<2xf32, #tpu.memory_space<smem>>
      memref.store %cst_14, %arg7[%c1_15] : memref<2xf32, #tpu.memory_space<smem>>
    } else {
    }
    %c0 = arith.constant 0 : index
    %c0_1 = arith.constant 0 : index
    %3 = vector.load %arg1[%c0, %c0_1] : memref<2x256xf32, #tpu.memory_space<vmem>>, vector<2x256xf32>
    %c0_2 = arith.constant 0 : index
    %c0_3 = arith.constant 0 : index
    %4 = vector.load %arg2[%c0_2, %c0_3] : memref<2x256xf32, #tpu.memory_space<vmem>>, vector<2x256xf32>
    %5 = arith.subf %3, %4 : vector<2x256xf32>
    %6 = arith.mulf %5, %5 : vector<2x256xf32>
    %7 = math.absf %3 : vector<2x256xf32>
    %cst = arith.constant 9.99999993E-9 : f32
    %8 = vector.broadcast %cst : f32 to vector<2x256xf32>
    %9 = arith.addf %7, %8 : vector<2x256xf32>
    %10 = math.sqrt %9 : vector<2x256xf32>
    %cst_4 = arith.constant dense<0.000000e+00> : vector<2xf32>
    %11 = vector.multi_reduction <add>, %6, %cst_4 [1] : vector<2x256xf32> to vector<2xf32>
    %12 = vector.shape_cast %11 : vector<2xf32> to vector<2x1xf32>
    %13 = vector.shape_cast %12 : vector<2x1xf32> to vector<1x2x1xf32>
    %cst_5 = arith.constant dense<0.000000e+00> : vector<1xf32>
    %14 = vector.multi_reduction <add>, %13, %cst_5 [1, 2] : vector<1x2x1xf32> to vector<1xf32>
    %15 = vector.shape_cast %14 : vector<1xf32> to vector<1x1x1xf32>
    %16 = vector.extract %15[0, 0, 0] : f32 from vector<1x1x1xf32>
    %17 = arith.mulf %10, %6 : vector<2x256xf32>
    %cst_6 = arith.constant dense<0.000000e+00> : vector<2xf32>
    %18 = vector.multi_reduction <add>, %17, %cst_6 [1] : vector<2x256xf32> to vector<2xf32>
    %19 = vector.shape_cast %18 : vector<2xf32> to vector<2x1xf32>
    %20 = vector.shape_cast %19 : vector<2x1xf32> to vector<1x2x1xf32>
    %cst_7 = arith.constant dense<0.000000e+00> : vector<1xf32>
    %21 = vector.multi_reduction <add>, %20, %cst_7 [1, 2] : vector<1x2x1xf32> to vector<1xf32>
    %22 = vector.shape_cast %21 : vector<1xf32> to vector<1x1x1xf32>
    %23 = vector.extract %22[0, 0, 0] : f32 from vector<1x1x1xf32>
    %c0_8 = arith.constant 0 : index
    %24 = memref.load %arg7[%c0_8] : memref<2xf32, #tpu.memory_space<smem>>
    %25 = arith.addf %24, %16 : f32
    %c0_9 = arith.constant 0 : index
    %26 = memref.load %arg7[%c0_9] : memref<2xf32, #tpu.memory_space<smem>>
    memref.store %25, %arg7[%c0_9] : memref<2xf32, #tpu.memory_space<smem>>
    %c1 = arith.constant 1 : index
    %27 = memref.load %arg7[%c1] : memref<2xf32, #tpu.memory_space<smem>>
    %28 = arith.addf %27, %23 : f32
    %c1_10 = arith.constant 1 : index
    %29 = memref.load %arg7[%c1_10] : memref<2xf32, #tpu.memory_space<smem>>
    memref.store %28, %arg7[%c1_10] : memref<2xf32, #tpu.memory_space<smem>>
    %c3_i32 = arith.constant 3 : i32
    %30 = arith.cmpi eq, %arg0, %c3_i32 : i32
    %31 = arith.extui %30 : i1 to i32
    %c0_i32_11 = arith.constant 0 : i32
    %32 = arith.cmpi ne, %31, %c0_i32_11 : i32
    scf.if %32 {
      %c0_12 = arith.constant 0 : index
      %33 = memref.load %arg7[%c0_12] : memref<2xf32, #tpu.memory_space<smem>>
      %cst_13 = arith.constant 4.8828125E-4 : f32
      %34 = arith.mulf %33, %cst_13 : f32
      %c1_14 = arith.constant 1 : index
      %35 = memref.load %arg7[%c1_14] : memref<2xf32, #tpu.memory_space<smem>>
      %cst_15 = arith.constant 4.8828125E-4 : f32
      %36 = arith.mulf %35, %cst_15 : f32
      %c0_16 = arith.constant 0 : index
      %c0_17 = arith.constant 0 : index
      %37 = vector.load %arg4[%c0_16, %c0_17] : memref<2x32xf32, #tpu.memory_space<vmem>>, vector<2x32xf32>
      %c0_18 = arith.constant 0 : index
      %c0_19 = arith.constant 0 : index
      %38 = vector.load %arg5[%c0_18, %c0_19] : memref<2x32xf32, #tpu.memory_space<vmem>>, vector<2x32xf32>
      %c0_20 = arith.constant 0 : index
      %c0_21 = arith.constant 0 : index
      %39 = vector.load %arg3[%c0_20, %c0_21] : memref<2x32xf32, #tpu.memory_space<vmem>>, vector<2x32xf32>
      %cst_22 = arith.constant 1.000000e+00 : f32
      %40 = vector.broadcast %cst_22 : f32 to vector<2x32xf32>
      %41 = arith.addf %40, %38 : vector<2x32xf32>
      %42 = arith.mulf %37, %37 : vector<2x32xf32>
      %43 = arith.subf %41, %42 : vector<2x32xf32>
      %44 = math.exp %38 : vector<2x32xf32>
      %45 = arith.subf %43, %44 : vector<2x32xf32>
      %46 = vector.shape_cast %45 : vector<2x32xf32> to vector<1x2x32xf32>
      %cst_23 = arith.constant dense<0.000000e+00> : vector<1xf32>
      %47 = vector.multi_reduction <add>, %46, %cst_23 [1, 2] : vector<1x2x32xf32> to vector<1xf32>
      %48 = vector.shape_cast %47 : vector<1xf32> to vector<1x1x1xf32>
      %49 = vector.extract %48[0, 0, 0] : f32 from vector<1x1x1xf32>
      %cst_24 = arith.constant -5.000000e-01 : f32
      %50 = arith.mulf %cst_24, %49 : f32
      %cst_25 = arith.constant 2.000000e+00 : f32
      %51 = arith.divf %50, %cst_25 : f32
      %52 = math.absf %39 : vector<2x32xf32>
      %cst_26 = arith.constant dense<0.000000e+00> : vector<32xf32>
      %53 = vector.multi_reduction <add>, %52, %cst_26 [0] : vector<2x32xf32> to vector<32xf32>
      %cst_27 = arith.constant 2.000000e+00 : f32
      %54 = vector.broadcast %cst_27 : f32 to vector<32xf32>
      %55 = arith.divf %53, %54 : vector<32xf32>
      %cst_28 = arith.constant 5.000000e-02 : f32
      %cst_29 = arith.constant 9.99999993E-9 : f32
      %56 = arith.addf %cst_28, %cst_29 : f32
      %cst_30 = arith.constant 9.99999993E-9 : f32
      %57 = vector.broadcast %cst_30 : f32 to vector<32xf32>
      %58 = arith.addf %55, %57 : vector<32xf32>
      %59 = vector.broadcast %56 : f32 to vector<32xf32>
      %60 = arith.divf %59, %58 : vector<32xf32>
      %61 = math.log %60 : vector<32xf32>
      %cst_31 = arith.constant 5.000000e-02 : f32
      %62 = vector.broadcast %cst_31 : f32 to vector<32xf32>
      %63 = arith.mulf %62, %61 : vector<32xf32>
      %cst_32 = arith.constant 1.000000e+00 : f32
      %cst_33 = arith.constant 5.000000e-02 : f32
      %64 = arith.subf %cst_32, %cst_33 : f32
      %cst_34 = arith.constant 1.000000e+00 : f32
      %cst_35 = arith.constant 5.000000e-02 : f32
      %65 = arith.subf %cst_34, %cst_35 : f32
      %cst_36 = arith.constant 9.99999993E-9 : f32
      %66 = arith.addf %65, %cst_36 : f32
      %cst_37 = arith.constant 1.000000e+00 : f32
      %67 = vector.broadcast %cst_37 : f32 to vector<32xf32>
      %68 = arith.subf %67, %55 : vector<32xf32>
      %cst_38 = arith.constant 9.99999993E-9 : f32
      %69 = vector.broadcast %cst_38 : f32 to vector<32xf32>
      %70 = arith.addf %68, %69 : vector<32xf32>
      %71 = vector.broadcast %66 : f32 to vector<32xf32>
      %72 = arith.divf %71, %70 : vector<32xf32>
      %73 = math.log %72 : vector<32xf32>
      %74 = vector.broadcast %64 : f32 to vector<32xf32>
      %75 = arith.mulf %74, %73 : vector<32xf32>
      %76 = arith.addf %63, %75 : vector<32xf32>
      %77 = vector.shape_cast %76 : vector<32xf32> to vector<1x32xf32>
      %cst_39 = arith.constant dense<0.000000e+00> : vector<1xf32>
      %78 = vector.multi_reduction <add>, %77, %cst_39 [1] : vector<1x32xf32> to vector<1xf32>
      %79 = vector.shape_cast %78 : vector<1xf32> to vector<1x1xf32>
      %80 = vector.extract %79[0, 0] : f32 from vector<1x1xf32>
      %cst_40 = arith.constant 5.000000e-01 : f32
      %81 = arith.mulf %cst_40, %36 : f32
      %82 = arith.addf %34, %81 : f32
      %cst_41 = arith.constant 0.00999999977 : f32
      %83 = arith.mulf %cst_41, %51 : f32
      %84 = arith.addf %82, %83 : f32
      %cst_42 = arith.constant 1.000000e-01 : f32
      %85 = arith.mulf %cst_42, %80 : f32
      %86 = arith.addf %84, %85 : f32
      %c0_43 = arith.constant 0 : index
      %87 = memref.load %arg6[%c0_43] : memref<8xf32, #tpu.memory_space<smem>>
      memref.store %86, %arg6[%c0_43] : memref<8xf32, #tpu.memory_space<smem>>
      %c1_44 = arith.constant 1 : index
      %88 = memref.load %arg6[%c1_44] : memref<8xf32, #tpu.memory_space<smem>>
      memref.store %34, %arg6[%c1_44] : memref<8xf32, #tpu.memory_space<smem>>
      %c2 = arith.constant 2 : index
      %89 = memref.load %arg6[%c2] : memref<8xf32, #tpu.memory_space<smem>>
      memref.store %36, %arg6[%c2] : memref<8xf32, #tpu.memory_space<smem>>
      %c3 = arith.constant 3 : index
      %90 = memref.load %arg6[%c3] : memref<8xf32, #tpu.memory_space<smem>>
      memref.store %51, %arg6[%c3] : memref<8xf32, #tpu.memory_space<smem>>
      %c4 = arith.constant 4 : index
      %91 = memref.load %arg6[%c4] : memref<8xf32, #tpu.memory_space<smem>>
      memref.store %80, %arg6[%c4] : memref<8xf32, #tpu.memory_space<smem>>
      %cst_45 = arith.constant 0.000000e+00 : f32
      %c5 = arith.constant 5 : index
      %92 = memref.load %arg6[%c5] : memref<8xf32, #tpu.memory_space<smem>>
      memref.store %cst_45, %arg6[%c5] : memref<8xf32, #tpu.memory_space<smem>>
      %cst_46 = arith.constant 0.000000e+00 : f32
      %c6 = arith.constant 6 : index
      %93 = memref.load %arg6[%c6] : memref<8xf32, #tpu.memory_space<smem>>
      memref.store %cst_46, %arg6[%c6] : memref<8xf32, #tpu.memory_space<smem>>
      %cst_47 = arith.constant 0.000000e+00 : f32
      %c7 = arith.constant 7 : index
      %94 = memref.load %arg6[%c7] : memref<8xf32, #tpu.memory_space<smem>>
      memref.store %cst_47, %arg6[%c7] : memref<8xf32, #tpu.memory_space<smem>>
    } else {
    }
    return
  }
  func.func @transform_0(%arg0: i32) -> (i32, i32) {
    %c0_i32 = arith.constant 0 : i32
    %c0_i32_0 = arith.constant 0 : i32
    return %c0_i32, %arg0 : i32, i32
  }
  func.func @transform_1(%arg0: i32) -> (i32, i32) {
    %c0_i32 = arith.constant 0 : i32
    %c0_i32_0 = arith.constant 0 : i32
    return %c0_i32, %arg0 : i32, i32
  }
  func.func @transform_2(%arg0: i32) -> (i32, i32) {
    %c0_i32 = arith.constant 0 : i32
    %c0_i32_0 = arith.constant 0 : i32
    %c0_i32_1 = arith.constant 0 : i32
    return %c0_i32, %c0_i32_0 : i32, i32
  }
  func.func @transform_3(%arg0: i32) -> (i32, i32) {
    %c0_i32 = arith.constant 0 : i32
    %c0_i32_0 = arith.constant 0 : i32
    %c0_i32_1 = arith.constant 0 : i32
    return %c0_i32, %c0_i32_0 : i32, i32
  }
  func.func @transform_4(%arg0: i32) -> (i32, i32) {
    %c0_i32 = arith.constant 0 : i32
    %c0_i32_0 = arith.constant 0 : i32
    %c0_i32_1 = arith.constant 0 : i32
    return %c0_i32, %c0_i32_0 : i32, i32
  }
  func.func @transform_5(%arg0: i32) -> i32 {
    %c0_i32 = arith.constant 0 : i32
    %c0_i32_0 = arith.constant 0 : i32
    return %c0_i32 : i32
  }
}

</mosaic_0001>

<bundles_post_ra>
// kernel: tpu_custom_call.1
= control target key start
LH: loop header
LB: loop body
LE: loop exit
PB: predicated region body
PF: predicated region fallthrough
CT: control target
= control target key end

     0   :  { %10 = vsyncpa [#allocation4], 0  ;;  %s951_s0 = inlined_call_operand.hbm [shape: f32[2,1024], index: 0, kind: input, shape index: {}]   ;;  %s952_s1 = inlined_call_operand.hbm [shape: f32[2,1024], index: 1, kind: input, shape index: {}]   ;;  %s953_s2 = inlined_call_operand.vmem [shape: f32[2,32], index: 2, kind: input, shape index: {}]   ;;  %s954_s3 = inlined_call_operand.vmem [shape: f32[2,32], index: 3, kind: input, shape index: {}]   ;;  %s955_s4 = inlined_call_operand.vmem [shape: f32[2,32], index: 4, kind: input, shape index: {}]   ;;  %s956_s5 = inlined_call_operand.hbm [shape: f32[8], index: 5, kind: output, shape index: {}]  }
   0x1   :  { %12 = vsyncpa [#allocation4 + $0x1], 0 }
   0x2   :  { %13 = vsyncpa [#allocation7], 0 }
   0x3   :  { %15 = vsyncpa [#allocation7 + $0x1], 0 }
   0x4   :  { %16 = vsyncpa [#allocation5], 0  ;;  %s767_s18 = smov 0   ;;  %s769_s19 = smov 0  }
   0x5   :  { %s771_s20 = smov 0   ;;  %s773_s21 = smov 0  }
   0x6 LB: > { %s786_s22 = sadd.s32 4294967295, %s729_s21   ;;  %s789_s23 = sadd.s32 1, %s729_s21   ;;  %s729_s21 = sphi %s773_s21, %s971_s21   ;;  %s725_s20 = sphi %s771_s20, %s970_s20   ;;  %s721_s19 = sphi %s769_s19, %s969_s19   ;;  %s717_s18 = sphi %s767_s18, %s968_s18  }
   0x7   : > { %s26_s24 = ssub.s32 %s729_s21, %s789_s23  ;;  %s29_s25 = sadd.s32 1, %s725_s20 }
   0x8   : > { %p27_p0 = scmp.eq.s32.totalorder %s26_s24, 0  ;;  %p36_p1 = scmp.ne.s32.totalorder %s725_s20, %s721_s19 }
   0x9   : > { %p37_p2 = scmp.eq.s32.totalorder %s729_s21, 0  ;;  %p42_p3 = scmp.ne.s32.totalorder %s721_s19, %s717_s18 }
   0xa   : > { %s799_s26 = scalar_select %p27_p0, %s725_s20, %s29_s25  }
   0xb   : > { %p38_p4 = por %p37_p2, %p36_p1  ;;  %p957_p5 = scmp.eq.s32.totalorder %s786_s22, 0 }
   0xc   : > { %p563_p6 = scmp.lt.s32.totalorder %s729_s21, 4  ;;  %s810_s28 = sand.u32 1, %s725_s20  }
   0xd   : > { %p805_p7 = por %p957_p5, %p42_p3  ;;  %s518_s29 = sshll.u32 %s810_s28, 2 }
   0xe   : > { %s535_s30 = sshll.u32 %s729_s21, 6  ;;  %s189_s9 = scalar_lea.vmem [#allocation3], %s518_s29 }
   0xf   : > { %s959_s27 = scalar_select %p805_p7, 1, 0 }
  0x10   : > { %s819_s8 = scalar_lea.hbm %s951_s0, %s535_s30  ;;  %s197_s10 = sshll.u32 %s189_s9, 4  ;;  %s823_s10 = int_to_ptr.vmem [resolvable:$true] %s197_s10 }
  0x11   : > { %p825_p8 = pnand %p563_p6, %p38_p4  ;;  %s186_s12 = scalar_lea.sflag [#allocation4], %s810_s28 }
  0x12   : > { %s615_s13 = scalar_lea.hbm %s819_s8, 64  ;;  %s620_s16 = scalar_lea.hbm %s951_s0, 256 }
  0x13   : > { %p616_p11 = scmp.ne.s32.totalorder %s819_s8, %s615_s13  ;;  %p617_p12 = pneg %p825_p8 }
  0x14   : > { %p621_p1 = scmp.lt.u32.totalorder %s819_s8, %s951_s0  ;;  %p622_p2 = scmp.lt.u32.totalorder %s620_s16, %s615_s13 }
  0x15   : > { %p618_p13 = pnand %p617_p12, %p616_p11  ;;  %p624_p4 = scmp.lt.u32.totalorder %s615_s13, %s819_s8 }
  0x16   : > { %p623_p3 = por %p622_p2, %p621_p1 }
  0x17   : > { %p619_p0 = pneg %p618_p13 }
  0x18   : > { %p625_p6 = por %p624_p4, %p623_p3 }
  0x1a   : > { %p626_p5 = pnand %p625_p6, %p619_p0 }
  0x1c   : > { %629 = shalt.err (!%p626_p5)
}
  0x1d   : > { %s630_s24 = scalar_lea.vmem %s823_s10, 64  ;;  %s731_s25 = smov [#allocation3]  }
  0x1e   : > { %p631_p11 = scmp.ne.s32.totalorder %s823_s10, %s630_s24  ;;  %s635_s6 = sshll.u32 %s731_s25, 4  ;;  %s636_s6 = int_to_ptr.vmem [resolvable:$false] %s635_s6 }
  0x1f   : > { %s637_s7 = scalar_lea.vmem %s636_s6, 128  ;;  %p638_p10 = scmp.lt.s32.totalorder %s823_s10, %s636_s6 }
  0x20   : > { %p633_p13 = pnand %p631_p11, %p617_p12  ;;  %p639_p1 = scmp.lt.s32.totalorder %s637_s7, %s630_s24 }
  0x22   : > { %p634_p9 = pneg %p633_p13  ;;  %p640_p2 = por %p639_p1, %p638_p10 }
  0x24   : > { %p641_p3 = pnand %p640_p2, %p634_p9 }
  0x26   : > { %644 = shalt.err (!%p641_p3)
}
  0x27   : > { %559 = dma.hbm_to_vmem [thread:$0]  (!%p825_p8), %s819_s8, 64, %s823_s10, %s186_s12  }
  0x28   : > { %p961_p5 = scmp.lt.s32.totalorder %s729_s21, 5  ;;  %p962_p0 = scmp.ge.s32.totalorder %s729_s21, 1 }
  0x29   : > { %s870_s15 = scalar_lea.hbm %s952_s1, %s535_s30  ;;  %s208_s16 = scalar_lea.vmem [#allocation6], %s518_s29 }
  0x2a   : > { %p861_p4 = pnand %p962_p0, %p961_p5  ;;  %s216_s17 = sshll.u32 %s208_s16, 4  ;;  %s217_s17 = int_to_ptr.vmem [resolvable:$true] %s216_s17 }
  0x2b   : > { %s205_s8 = scalar_lea.sflag [#allocation7], %s810_s28  ;;  %s645_s10 = scalar_lea.hbm %s870_s15, 64 }
  0x2c   : > { %s963_s9 = scalar_select %p861_p4, 1, 0 }
  0x2d   : > { %p646_p9 = scmp.ne.s32.totalorder %s870_s15, %s645_s10  ;;  %s650_s30 = scalar_lea.hbm %s952_s1, 256 }
  0x2e   : > { %p651_p11 = scmp.lt.u32.totalorder %s870_s15, %s952_s1  ;;  %p652_p13 = scmp.lt.u32.totalorder %s650_s30, %s645_s10 }
  0x2f   : > { %p648_p10 = pnand %p646_p9, %p617_p12  ;;  %p654_p2 = scmp.lt.u32.totalorder %s645_s10, %s870_s15 }
  0x30   : > { %p653_p1 = por %p652_p13, %p651_p11 }
  0x31   : > { %p649_p6 = pneg %p648_p10 }
  0x32   : > { %p655_p3 = por %p654_p2, %p653_p1 }
  0x34   : > { %p656_p5 = pnand %p655_p3, %p649_p6 }
  0x36   : > { %659 = shalt.err (!%p656_p5)
}
  0x37   : > { %s660_s28 = scalar_lea.vmem %s217_s17, 64  ;;  %s732_s29 = smov [#allocation6]  }
  0x38   : > { %p661_p0 = scmp.ne.s32.totalorder %s217_s17, %s660_s28  ;;  %s665_s25 = sshll.u32 %s732_s29, 4  ;;  %s666_s25 = int_to_ptr.vmem [resolvable:$false] %s665_s25 }
  0x39   : > { %s667_s6 = scalar_lea.vmem %s666_s25, 128  ;;  %p668_p7 = scmp.lt.s32.totalorder %s217_s17, %s666_s25 }
  0x3a   : > { %p663_p9 = pnand %p661_p0, %p617_p12  ;;  %p669_p4 = scmp.lt.s32.totalorder %s667_s6, %s660_s28 }
  0x3c   : > { %p664_p10 = pneg %p663_p9  ;;  %p670_p11 = por %p669_p4, %p668_p7 }
  0x3e   : > { %p671_p13 = pnand %p670_p11, %p664_p10 }
  0x40   : > { %674 = shalt.err (!%p671_p13)
}
  0x41   : > { %562 = dma.hbm_to_vmem [thread:$0]  (!%p825_p8), %s870_s15, 64, %s217_s17, %s205_s8  }
  0x42   : > { %p964_p6 = scmp.ne.s32.totalorder %s963_s9, 0 }
  0x43   : > { %s227_s7 = sand.u32 (!%p964_p6), 1, %s721_s19   ;;  %p965_p12 = scmp.ne.s32.totalorder (!%p964_p6), %s959_s27, 0 }
  0x44   : > { %225 = sbr.rel (%p964_p6) target bundleno = 489 (0x1e9), region = 40  ;;  %s525_s13 = sshll.u32 (!%p964_p6), %s227_s7, 2 }
  0x45   : > { %s228_s14 = scalar_lea.sflag (!%p964_p6), [#allocation4], %s227_s7  ;;  %s231_s16 = scalar_lea.vmem (!%p964_p6), [#allocation3], %s525_s13 }
  0x4b   : > { %704 = dma.done.wait (%p965_p12), %s228_s14, 64  }
  0x4c   : > { %706 = vsyncadd (%p965_p12), %s228_s14, 4294967232  ;;  %s237_s10 = scalar_lea.sflag [#allocation7], %s227_s7  ;;  %s240_s21 = scalar_lea.vmem [#allocation6], %s525_s13 }
  0x4d   : > { %708 = dma.done.wait (%p965_p12), %s237_s10, 64  }
  0x4e   : > { %710 = vsyncadd (%p965_p12), %s237_s10, 4294967232  ;;  %v294_v0 = vlaneseq  ;;  %v733_v1 = vmov 1983009808   ;;  %v277_v5 = vld [vmem:[%s231_s16] sm:$0xf]  ;;  %vm301_vm0 = vcmask 1041408  }
  0x4f   : > { %v292_v2 = vunpack.c.l.s4 %v733_v1  ;;  %v278_v6 = vld [vmem:[%s240_s21] sm:$0xf]  ;;  %v281_v8 = vand.u32 2147483647, %v277_v5  ;;  %vm307_vm3 = vcmask 1024   ;;  %s734_s27 = smov 0.0  }
  0x50   : > { %v295_v4 = vshrl.u32 %v294_v0, 7  ;;  %v279_v7 = vsub.f32 %v277_v5, %v278_v6  ;;  %p966_p7 = scmp.eq.s32.totalorder %s786_s22, 0  ;;  %p529_p4 = scmp.ne.s32.totalorder %s786_s22, 3 }
  0x51   : > { %v293_v3 = vunpack.c.0.s8 %v292_v2  ;;  %v282_v11 = vadd.f32 1e-08, %v281_v8  ;;  %v362_v46 = vld [vmem:[%s955_s4] sm:$0x3] (!%p529_p4)  ;;  %vm370_vm4 = vcmask (!%p529_p4), 254976   ;;  %vm409_vm5 = vcmask (!%p529_p4), 261120  }
  0x52   : > { %v280_v10 = vmul.f32 %v279_v7, %v279_v7  ;;  %550 = sst [smem:[#allocation2]] (%p966_p7), %s734_s27  ;;  %p967_p8 = pmov %p966_p7  ;;  %v363_v47 = vld [vmem:[%s953_s2] sm:$0x3] (!%p529_p4)  ;;  %v367_v48 = vmul.f32 (!%p529_p4), 1.442695, %v362_v46  ;;  %v364_v53 = vadd.f32 (!%p529_p4), 1.0, %v362_v46 }
  0x53   : > { %v296_v9 = vsub.s32 %v293_v3, %v295_v4  ;;  %603 = vrsqrt.f32 %v282_v11  ;;  %vm285_vm1 = vcmp.eq.f32.partialorder %v282_v11, inf  ;;  %v288_v18 = vand.u32 2147483648, %v282_v11  ;;  %s345_s11 = sld [smem:[#allocation2]]  ;;  %v361_v50 = vld [vmem:[%s954_s3] sm:$0x3] (!%p529_p4)  ;;  %s735_s21 = smov (!%p529_p4), 0.0  }
  0x54   : > { %vm287_vm2 = vcmp.eq.f32.partialorder %v282_v11, 0.0  ;;  %551 = sst [smem:[#allocation2 + $0x1]] (%p967_p8), %s734_s27  ;;  %v385_v49 = vand.u32 (!%p529_p4), 2147483647, %v363_v47  ;;  %605 = vpow2.f32 (!%p529_p4), %v367_v48  ;;  %v365_v54 = vmul.f32 (!%p529_p4), %v361_v50, %v361_v50 }
  0x55   : > { %v297_v12 = vrot.slane %v280_v10, %v296_v9  ;;  %s528_s17 = sld [smem:[#allocation2 + $0x1]]  ;;  %431 = sst [smem:[#allocation8 + $0x5]] (!%p529_p4), %s735_s21 }
  0x56   : > { %v386_v51 = vsel (!%p529_p4), %vm370_vm4, %v385_v49, 0.0  ;;  %v366_v57 = vsub.f32 (!%p529_p4), %v364_v53, %v365_v54  ;;  %433 = sst [smem:[#allocation8 + $0x6]] (!%p529_p4), %s735_s21 }
  0x57   : > { %v298_v13 = vcombine.high %v297_v12, %v297_v12  ;;  %v302_v14 = vsel %vm301_vm0, %v297_v12, 0.0  ;;  %v387_v52 = vrot.slane (!%p529_p4), %v386_v51, 4  ;;  %435 = sst [smem:[#allocation8 + $0x7]] (!%p529_p4), %s735_s21 }
  0x59   : > { %v303_v15 = vsel %vm301_vm0, %v298_v13, 0.0  ;;  %v388_v55 = vadd.f32 (!%p529_p4), %v387_v52, %v386_v51 }
  0x5a   : > { %v304_v16 = vadd.f32 %v303_v15, %v302_v14 }
  0x5b   : > { %v389_v56 = vrot.slane (!%p529_p4), %v388_v55, 2 }
  0x5c   : > { %305 = vadd.xlane.f32.xlu0 %v304_v16 }
  0x5d   : > { %v604_v17 = vpop.eup %603  ;;  %v390_v58 = vadd.f32 (!%p529_p4), %v389_v56, %v388_v55 }
  0x5e   : > { %v284_v19 = vmul.f32 %v604_v17, %v282_v11  ;;  %v606_v59 = vpop.eup (!%p529_p4), %605 }
  0x5f   : > { %v391_v60 = vrot.slane (!%p529_p4), %v390_v58, 1  ;;  %v369_v61 = vsub.f32 (!%p529_p4), %v366_v57, %v606_v59 }
  0x60   : > { %v286_v20 = vsel %vm285_vm1, %v282_v11, %v284_v19 }
  0x61   : > { %v289_v21 = vsel %vm287_vm2, %v288_v18, %v286_v20  ;;  %v392_v62 = vadd.f32 (!%p529_p4), %v391_v60, %v390_v58  ;;  %v371_v63 = vsel (!%p529_p4), %vm370_vm4, %v369_v61, 0.0 }
  0x62   : > { %v318_v22 = vmul.f32 %v289_v21, %v280_v10 }
  0x63   : > { %v394_v0 = vmul.f32 (!%p529_p4), 0.5, %v392_v62 }
  0x64   : > { %v326_v23 = vrot.slane %v318_v22, %v296_v9 }
  0x65   : > { %v395_v1 = vadd.f32 (!%p529_p4), 1e-08, %v394_v0  ;;  %v401_v2 = vsub.f32 (!%p529_p4), 1.0, %v394_v0 }
  0x66   : > { %v327_v24 = vcombine.high %v326_v23, %v326_v23  ;;  %v330_v25 = vsel %vm301_vm0, %v326_v23, 0.0 }
  0x67   : > { %607 = vrcp.f32 (!%p529_p4), %v395_v1  ;;  %v402_v3 = vadd.f32 (!%p529_p4), 1e-08, %v401_v2 }
  0x68   : > { %v331_v26 = vsel %vm301_vm0, %v327_v24, 0.0 }
  0x69   : > { %v332_v27 = vadd.f32 %v331_v26, %v330_v25  ;;  %609 = vrcp.f32 (!%p529_p4), %v402_v3 }
  0x6b   : > { %333 = vadd.xlane.f32.xlu0 %v332_v27 }
  0x6f   : > { %372 = vadd.xlane.f32.xlu0 (!%p529_p4), %v371_v63 }
  0x71   : > { %v608_v4 = vpop.eup (!%p529_p4), %607 }
  0x72   : > { %v397_v5 = vmul.f32 (!%p529_p4), 0.050000012, %v608_v4 }
  0x73   : > { %v610_v6 = vpop.eup (!%p529_p4), %609 }
  0x74   : > { %611 = vlog2.f32 (!%p529_p4), %v397_v5  ;;  %v404_v7 = vmul.f32 (!%p529_p4), 0.95, %v610_v6 }
  0x76   : > { %613 = vlog2.f32 (!%p529_p4), %v404_v7 }
  0x7e   : > { %v612_v8 = vpop.eup (!%p529_p4), %611 }
  0x7f   : > { %v399_v9 = vmul.f32 (!%p529_p4), 0.6931472, %v612_v8 }
  0x80   : > { %v614_v10 = vpop.eup (!%p529_p4), %613 }
  0x81   : > { %v400_v11 = vmul.f32 (!%p529_p4), 0.05, %v399_v9  ;;  %v406_v12 = vmul.f32 (!%p529_p4), 0.6931472, %v614_v10 }
  0x83   : > { %v407_v13 = vmul.f32 (!%p529_p4), 0.95, %v406_v12 }
  0x85   : > { %v408_v14 = vadd.f32 (!%p529_p4), %v407_v13, %v400_v11 }
  0x87   : > { %v410_v15 = vsel (!%p529_p4), %vm409_vm5, %v408_v14, 0.0 }
  0x88   : > { %411 = vadd.xlane.f32.xlu0 (!%p529_p4), %v410_v15 }
  0xe9   : > { %v306_v28 = vpop.xlane.xlu0 %305 }
  0xea   : > { %v308_v29 = vsel %vm307_vm3, %v306_v28, 0.0 }
  0xeb   : > { %309 = vadd.xlane.f32.xlu1 %v308_v29 }
  0xf8   : > { %v334_v30 = vpop.xlane.xlu0 %333 }
  0xf9   : > { %v335_v31 = vsel %vm307_vm3, %v334_v30, 0.0 }
  0xfa   : > { %336 = vadd.xlane.f32.xlu1 %v335_v31 }
  0xfc   : > { %v373_v16 = vpop.xlane.xlu0 (!%p529_p4), %372 }
  0xfd   : > { %v374_v17 = vrot.slane (!%p529_p4), %v373_v16, 4 }
  0xff   : > { %v375_v18 = vadd.f32 (!%p529_p4), %v374_v17, %v373_v16 }
 0x101   : > { %v376_v19 = vrot.slane (!%p529_p4), %v375_v18, 2 }
 0x103   : > { %v377_v20 = vadd.f32 (!%p529_p4), %v376_v19, %v375_v18 }
 0x105   : > { %v378_v21 = vrot.slane (!%p529_p4), %v377_v20, 1 }
 0x107   : > { %v379_v22 = vadd.f32 (!%p529_p4), %v378_v21, %v377_v20 }
 0x115   : > { %v412_v23 = vpop.xlane.xlu0 (!%p529_p4), %411 }
 0x178   : > { %v310_v32 = vpop.xlane.xlu1 %309 }
 0x179   : > { %v311_v33 = vrot.slane %v310_v32, 4 }
 0x17b   : > { %v312_v34 = vadd.f32 %v311_v33, %v310_v32 }
 0x17d   : > { %v313_v35 = vrot.slane %v312_v34, 2 }
 0x17f   : > { %v314_v36 = vadd.f32 %v313_v35, %v312_v34 }
 0x181   : > { %v315_v37 = vrot.slane %v314_v36, 1 }
 0x183   : > { %v316_v38 = vadd.f32 %v315_v37, %v314_v36 }
 0x185   : > { %537 = vpush %v316_v38 }
 0x187   : > { %v337_v39 = vpop.xlane.xlu1 %336 }
 0x188   : > { %v338_v40 = vrot.slane %v337_v39, 4 }
 0x18a   : > { %v339_v41 = vadd.f32 %v338_v40, %v337_v39 }
 0x18c   : > { %v340_v42 = vrot.slane %v339_v41, 2 }
 0x18e   : > { %v341_v43 = vadd.f32 %v340_v42, %v339_v41 }
 0x190   : > { %v342_v44 = vrot.slane %v341_v43, 1 }
 0x192   : > { %v343_v45 = vadd.f32 %v342_v44, %v341_v43 }
 0x194   : > { %539 = vpush %v343_v45 }
 0x195   : > { %541 = vpush (!%p529_p4), %v379_v22 }
 0x196   : > { %543 = vpush (!%p529_p4), %v412_v23 }
 0x1b6   : > { %s538_s9 = spop %537 }
 0x1b7   : > { %s346_s15 = sadd.f32 %s538_s9, %s345_s11 }
 0x1b9   : > { %348 = sst [smem:[#allocation2]] %s346_s15 }
 0x1ba   : > { %s357_s6 = sld [smem:[#allocation2]] (!%p529_p4) }
 0x1c0   : > { %s358_s13 = smul.f32 (!%p529_p4), 0.00048828125, %s357_s6 }
 0x1c2   : > { %356 = sbr.rel (%p529_p4) target bundleno = 474 (0x1da), region = 56  ;;  %423 = sst [smem:[#allocation8 + $0x1]] (!%p529_p4), %s358_s13 }
 0x1c5   : > { %s540_s8 = spop %539 }
 0x1c6   : > { %s350_s12 = sadd.f32 %s540_s8, %s528_s17  ;;  %s542_s27 = spop (!%p529_p4), %541 }
 0x1c7   : > { %s381_s11 = smul.f32 (!%p529_p4), -0.5, %s542_s27  ;;  %s544_s17 = spop (!%p529_p4), %543 }
 0x1c8   : > { %352 = sst [smem:[#allocation2 + $0x1]] %s350_s12  ;;  %s418_s12 = smul.f32 (!%p529_p4), 0.1, %s544_s17 }
 0x1c9   : > { %s530_s7 = sld [smem:[#allocation2 + $0x1]]  ;;  %s384_s9 = smul.f32 0.5, %s381_s11 }
 0x1ca   : > { %429 = sst [smem:[#allocation8 + $0x4]] %s544_s17 }
 0x1cb   : > { %427 = sst [smem:[#allocation8 + $0x3]] %s384_s9  ;;  %s416_s15 = smul.f32 0.01, %s384_s9 }
 0x1cf   : > { %s360_s14 = smul.f32 0.00048828125, %s530_s7 }
 0x1d1   : > { %425 = sst [smem:[#allocation8 + $0x2]] %s360_s14  ;;  %s414_s16 = smul.f32 0.5, %s360_s14 }
 0x1d3   : > { %s415_s10 = sadd.f32 %s414_s16, %s358_s13 }
 0x1d5   : > { %s417_s8 = sadd.f32 %s416_s15, %s415_s10 }
 0x1d7   : > { %s419_s30 = sadd.f32 %s418_s12, %s417_s8 }
 0x1d9   : > { %421 = sst [smem:[#allocation8]] %s419_s30 }
 0x1da PF: > { %p565_p1 = scmp.eq.s32.totalorder %s786_s22, 3  ;;  %s675_s28 = scalar_lea.hbm %s956_s5, 16 }
 0x1db   : > { %p676_p2 = scmp.ne.s32.totalorder %s956_s5, %s675_s28  ;;  %p681_p0 = scmp.lt.u32.totalorder %s675_s28, %s956_s5 }
 0x1dd   : > { %p677_p3 = pnand %p676_p2, %p565_p1 }
 0x1df   : > { %p678_p5 = pneg %p677_p3 }
 0x1e1   : > { %p683_p9 = pnand %p681_p0, %p678_p5 }
 0x1e3   : > { %686 = shalt.err (!%p683_p9)
}
 0x1e4   : > { %s736_s13 = smov [#allocation8]  }
 0x1e5   : > { %553 = dma.smem_to_hbm (%p565_p1), %s736_s13, 16, %s956_s5, [#allocation5]  }
 0x1e6   : > { %712 = dma.done.wait (%p565_p1), [#allocation5], 16  }
 0x1e7   : > { %714 = vsyncadd (%p565_p1), [#allocation5], 4294967280 }
 0x1e8   : > { %449 = sfence }
 0x1e9 PF: > { %p19_p10 = scmp.ge.s32.totalorder %s789_s23, 6   ;;  %s968_s18 = smov %s721_s19 }
 0x1ea   : > { %s969_s19 = smov %s725_s20  ;;  %s970_s20 = smov %s799_s26 }
 0x1eb   : > { %s971_s21 = smov %s789_s23  ;;  %21 = sbr.rel (!%p19_p10) target bundleno = 6 (0x6), region = 110 }
 0x1f2   :  { %455 = vsyncpa [#allocation4], 1 }
 0x1f3   :  { %457 = vsyncpa [#allocation4 + $0x1], 1 }
 0x1f4   :  { %458 = vsyncpa [#allocation7], 1 }
 0x1f5   :  { %460 = vsyncpa [#allocation7 + $0x1], 1 }
 0x1f6   :  { %461 = vsyncpa [#allocation5], 1 }
 0x1f7   :  { %463 = vsyncpa [#allocation5 + $0x1], 1 }

</bundles_post_ra>
